<compile_context>
chip_gen: v6e
topology: v6e:2x2x1
jax: 0.10.0
libtpu: 0.0.40
codegen_flags: <defaults>
</compile_context>

<pallas_src>
import functools

import numpy as np
import jax
import jax.numpy as jnp
from jax import lax
from jax.experimental import pallas as pl
from jax.experimental.pallas import tpu as pltpu

LANES = 128


def eca_k_size(channels: int, gamma: int = 2, b: int = 1) -> int:
    t = int(abs((np.log2(channels) + b) / gamma))
    return t if t % 2 else t + 1


def build_masked_taps(w_conv: jnp.ndarray, channels: int) -> jnp.ndarray:
    """(k,) Conv1d weight -> (8, 128) per-lane tap weights.

    Lane l corresponds to channel c = l % channels of the lane-tiled pooled
    vector.  Tap j contributes w[j] * y[c + j - pad]; lanes where c + j - pad
    falls outside [0, channels) get weight 0 (Conv1d zero padding)."""
    k = int(w_conv.shape[0])
    pad = (k - 1) // 2
    c = jnp.arange(LANES) % channels
    taps = []
    for j in range(k):
        d = j - pad
        valid = jnp.logical_and(c + d >= 0, c + d < channels)
        taps.append(jnp.where(valid, w_conv[j].astype(jnp.float32), 0.0))
    wm = jnp.stack(taps, axis=0)                     # (k, 128)
    if k < 8:                                        # pad rows for (8,128) tiling
        wm = jnp.pad(wm, ((0, 8 - k), (0, 0)))
    return wm


def eca_kernel(w_ref, x_ref, o_ref, *, channels, k, pad, inv_n, chunk_rows):
    # w_ref: (8, 128) masked tap weights (tiny, VMEM resident)
    # x_ref / o_ref: (Bt, R, 128) lane-dense view of Bt batches' (N, C) features
    bt, rows, lanes = x_ref.shape
    n_chunks = rows // chunk_rows
    unroll = n_chunks <= 4

    # 1) Global average pool: chunked f32 row-sum (keeps live f32 state to a
    #    single (Bt,128) accumulator), then lane-roll folds so EVERY lane l
    #    holds the mean of its channel c = l % C.
    def sum_body(i, acc):
        r0 = pl.multiple_of(i * chunk_rows, chunk_rows)
        xc = x_ref[:, pl.ds(r0, chunk_rows), :]
        return acc + jnp.sum(xc.astype(jnp.float32), axis=1)

    s = lax.fori_loop(0, n_chunks, sum_body,
                      jnp.zeros((bt, lanes), jnp.float32), unroll=unroll)

    sh = channels
    while sh < lanes:
        s = s + pltpu.roll(s, shift=sh, axis=1)   # lane axis (positive index)
        sh *= 2
    y = s * inv_n                                 # (Bt, 128) per-channel means

    # 2) Conv1d(1,1,k, zero pad) over channels as a k-tap XLU roll stencil.
    #    rolled_j[l] = y[channel (l%C) + j - pad]; edge mask baked into w_ref.
    conv = jnp.zeros_like(y)
    for j in range(k):
        shift = (pad - j) % lanes
        yj = pltpu.roll(y, shift=shift, axis=1) if shift else y
        conv = conv + w_ref[j:j + 1, :] * yj      # (Bt, 128)

    # 3) sigmoid gate (EUP); cast once so the multiply stays in x's dtype
    #    (bf16-native on v6e/v7x, no full-block f32 temp).
    att = jax.nn.sigmoid(conv).astype(o_ref.dtype)   # (Bt, 128)
    att3 = att[:, None, :]                           # hoisted out of the loop

    # 4) broadcast multiply onto every point; chunked full-lane-width stores.
    @pl.loop(0, n_chunks, unroll=unroll)
    def _(i):
        r0 = pl.multiple_of(i * chunk_rows, chunk_rows)
        xc = x_ref[:, pl.ds(r0, chunk_rows), :]
        o_ref[:, pl.ds(r0, chunk_rows), :] = xc * att3


def eca_layer(x: jnp.ndarray, w_conv: jnp.ndarray) -> jnp.ndarray:
    B, N, C = x.shape
    k = int(w_conv.shape[0])
    pad = (k - 1) // 2
    assert LANES % C == 0 and (C & (C - 1)) == 0, "C must be a power of two <= 128"
    assert (N * C) % LANES == 0, "N*C must be a multiple of 128"
    R = (N * C) // LANES

    itemsize = jnp.dtype(x.dtype).itemsize
    per_batch_bytes = R * LANES * itemsize
    tap_bytes = 8 * LANES * 4

    # Per-generation VMEM budget (v5e/v6e 128 MiB, v7x 64 MiB per TC).
    try:
        vmem_cap = int(pltpu.get_tpu_info().vmem_capacity_bytes)
    except Exception:
        vmem_cap = 64 * 1024 * 1024
    budget = int(vmem_cap * 0.85)

    # Batch-tiling: fuse as many batches per grid step as the double-buffered
    # (2x in + 2x out) pipeline footprint allows.  Large N -> Bt = 1.
    max_bt = max(1, budget // (4 * per_batch_bytes))
    bt = 1
    for d in range(1, B + 1):
        if B % d == 0 and d <= max_bt:
            bt = d
    # TODO(synk): if even Bt=1 exceeds the budget (huge N on v7x's 64 MiB VMEM),
    # fall back to a two-pass pool/apply split with a parallel R-tile grid axis.

    # In-kernel row-chunk size: bounds vreg live ranges for large R.
    if R <= 512:
        chunk_rows = R
    else:
        chunk_rows = next(c for c in range(512, 0, -1) if R % c == 0)

    needed = 4 * bt * per_batch_bytes + tap_bytes + (2 << 20)
    vmem_limit = max(min(budget, needed), 4 << 20)
    vmem_limit = int(min(vmem_limit, vmem_cap))

    x_flat = x.reshape(B, R, LANES)          # row-major merge/split of (N, C)
    w_taps = build_masked_taps(w_conv, C)    # (8, 128) parameter glue

    kernel = functools.partial(eca_kernel, channels=C, k=k, pad=pad,
                               inv_n=float(1.0 / N), chunk_rows=chunk_rows)
    out_flat = pl.pallas_call(
        kernel,
        out_shape=jax.ShapeDtypeStruct((B, R, LANES), x.dtype),
        grid_spec=pltpu.PrefetchScalarGridSpec(
            num_scalar_prefetch=0,
            grid=(B // bt,),
            in_specs=[
                pl.BlockSpec((w_taps.shape[0], LANES), lambda b: (0, 0)),
                pl.BlockSpec((bt, R, LANES), lambda b: (b, 0, 0)),
            ],
            out_specs=pl.BlockSpec((bt, R, LANES), lambda b: (b, 0, 0)),
        ),
        # Pure in-place scale of x: alias the input buffer to the output.
        input_output_aliases={1: 0},
        compiler_params=pltpu.CompilerParams(
            dimension_semantics=("parallel",),   # batch groups shard across TCs
            vmem_limit_bytes=vmem_limit,
        ),
    )(w_taps, x_flat)
    return out_flat.reshape(B, N, C)


def eca_reference(x: jnp.ndarray, w_conv: jnp.ndarray) -> jnp.ndarray:
    """Pure-JAX reference matching the PyTorch forward semantics."""
    B, N, C = x.shape
    k = w_conv.shape[0]
    pad = (k - 1) // 2
    y = jnp.mean(x, axis=1)                                   # (B, C)
    y_pad = jnp.pad(y, ((0, 0), (pad, pad)))
    out = jnp.zeros_like(y)
    for j in range(k):
        out = out + w_conv[j] * y_pad[:, j:j + C]
    att = jax.nn.sigmoid(out)                                 # (B, C)
    return x * att[:, None, :]


if __name__ == "__main__":
    B, N, C = 2, 64, 16          # 2 batches, 64 points each, 16 channels
    k_size = eca_k_size(C)       # C=16 -> k=3, padding=1

    key = jax.random.PRNGKey(0)
    kx, kw = jax.random.split(key)
    x = jax.random.normal(kx, (B, N, C), dtype=jnp.float32)
    # deterministic Conv1d weight, shape (k,) == nn.Conv1d(1,1,k).weight[0,0]
    w_conv = jax.random.normal(kw, (k_size,), dtype=jnp.float32) * 0.5

    ref = eca_reference(x, w_conv)               # computed before kernel call
    out = jax.block_until_ready(eca_layer(x, w_conv))

    np.testing.assert_allclose(np.asarray(out), np.asarray(ref),
                               rtol=1e-4, atol=1e-4)
    print("KERNEL_OK")
</pallas_src>

<mosaic_0001>
module attributes {stable_mosaic.version = 11 : i64} {
  func.func @eca_kernel(%arg0: i32, %arg1: memref<8x128xf32, #tpu.memory_space<vmem>>, %arg2: memref<2x8x128xf32, #tpu.memory_space<vmem>>, %arg3: memref<2x8x128xf32, #tpu.memory_space<vmem>>) attributes {dimension_semantics = [#tpu.dimension_semantics<parallel>], iteration_bounds = array<i64: 1>, scalar_prefetch = 0 : i64, scratch_operands = 0 : i64, tpu.core_type = #tpu.core_type<tc>, window_params = [{pipeline_mode = #tpu.pipeline_mode<synchronous>, transform_indices = @transform_0, window_bounds = array<i64: 8, 128>}, {transform_indices = @transform_1, window_bounds = array<i64: 2, 8, 128>}, {transform_indices = @transform_2, window_bounds = array<i64: 2, 8, 128>}]} {
    %cst = arith.constant 0.000000e+00 : f32
    %0 = vector.broadcast %cst : f32 to vector<2x128xf32>
    %c0_i32 = arith.constant 0 : i32
    %c8_i32 = arith.constant 8 : i32
    %1 = arith.muli %c0_i32, %c8_i32 : i32
    %2 = tpu.assume_multiple %1, 8 : i32
    %c0 = arith.constant 0 : index
    %3 = arith.index_cast %2 : i32 to index
    %c0_0 = arith.constant 0 : index
    %4 = vector.load %arg2[%c0, %3, %c0_0] : memref<2x8x128xf32, #tpu.memory_space<vmem>>, vector<2x8x128xf32>
    %cst_1 = arith.constant dense<0.000000e+00> : vector<2x128xf32>
    %5 = vector.multi_reduction <add>, %4, %cst_1 [1] : vector<2x8x128xf32> to vector<2x128xf32>
    %6 = arith.addf %0, %5 : vector<2x128xf32>
    %c1_i32 = arith.constant 1 : i32
    %c16_i32 = arith.constant 16 : i32
    %7 = tpu.dynamic_rotate %6 by %c16_i32 dim 1 : vector<2x128xf32>, i32 -> vector<2x128xf32>
    %8 = arith.addf %6, %7 : vector<2x128xf32>
    %c32_i32 = arith.constant 32 : i32
    %9 = tpu.dynamic_rotate %8 by %c32_i32 dim 1 : vector<2x128xf32>, i32 -> vector<2x128xf32>
    %10 = arith.addf %8, %9 : vector<2x128xf32>
    %c64_i32 = arith.constant 64 : i32
    %11 = tpu.dynamic_rotate %10 by %c64_i32 dim 1 : vector<2x128xf32>, i32 -> vector<2x128xf32>
    %12 = arith.addf %10, %11 : vector<2x128xf32>
    %cst_2 = arith.constant 1.562500e-02 : f32
    %13 = vector.broadcast %cst_2 : f32 to vector<2x128xf32>
    %14 = arith.mulf %12, %13 : vector<2x128xf32>
    %cst_3 = arith.constant 0.000000e+00 : f32
    %15 = vector.broadcast %cst_3 : f32 to vector<2x128xf32>
    %c1_i32_4 = arith.constant 1 : i32
    %16 = tpu.dynamic_rotate %14 by %c1_i32_4 dim 1 : vector<2x128xf32>, i32 -> vector<2x128xf32>
    %c0_5 = arith.constant 0 : index
    %c0_6 = arith.constant 0 : index
    %17 = vector.load %arg1[%c0_5, %c0_6] : memref<8x128xf32, #tpu.memory_space<vmem>>, vector<1x128xf32>
    %18 = vector.broadcast %17 : vector<1x128xf32> to vector<2x128xf32>
    %19 = arith.mulf %18, %16 : vector<2x128xf32>
    %20 = arith.addf %15, %19 : vector<2x128xf32>
    %c1 = arith.constant 1 : index
    %c0_7 = arith.constant 0 : index
    %21 = vector.load %arg1[%c1, %c0_7] : memref<8x128xf32, #tpu.memory_space<vmem>>, vector<1x128xf32>
    %22 = vector.broadcast %21 : vector<1x128xf32> to vector<2x128xf32>
    %23 = arith.mulf %22, %14 : vector<2x128xf32>
    %24 = arith.addf %20, %23 : vector<2x128xf32>
    %c127_i32 = arith.constant 127 : i32
    %25 = tpu.dynamic_rotate %14 by %c127_i32 dim 1 : vector<2x128xf32>, i32 -> vector<2x128xf32>
    %c2 = arith.constant 2 : index
    %c0_8 = arith.constant 0 : index
    %26 = vector.load %arg1[%c2, %c0_8] : memref<8x128xf32, #tpu.memory_space<vmem>>, vector<1x128xf32>
    %27 = vector.broadcast %26 : vector<1x128xf32> to vector<2x128xf32>
    %28 = arith.mulf %27, %25 : vector<2x128xf32>
    %29 = arith.addf %24, %28 : vector<2x128xf32>
    %30 = arith.negf %29 : vector<2x128xf32>
    %31 = math.exp %30 : vector<2x128xf32>
    %cst_9 = arith.constant 1.000000e+00 : f32
    %32 = vector.broadcast %cst_9 : f32 to vector<2x128xf32>
    %33 = arith.addf %32, %31 : vector<2x128xf32>
    %34 = arith.divf %32, %33 : vector<2x128xf32>
    %35 = vector.shape_cast %34 : vector<2x128xf32> to vector<2x1x128xf32>
    %c0_i32_10 = arith.constant 0 : i32
    %c1_i32_11 = arith.constant 1 : i32
    %36 = arith.muli %c0_i32_10, %c1_i32_11 : i32
    %c0_i32_12 = arith.constant 0 : i32
    %37 = arith.addi %c0_i32_12, %36 : i32
    %c8_i32_13 = arith.constant 8 : i32
    %38 = arith.muli %37, %c8_i32_13 : i32
    %39 = tpu.assume_multiple %38, 8 : i32
    %c0_14 = arith.constant 0 : index
    %40 = arith.index_cast %39 : i32 to index
    %c0_15 = arith.constant 0 : index
    %41 = vector.load %arg2[%c0_14, %40, %c0_15] : memref<2x8x128xf32, #tpu.memory_space<vmem>>, vector<2x8x128xf32>
    %42 = vector.broadcast %35 : vector<2x1x128xf32> to vector<2x8x128xf32>
    %43 = arith.mulf %41, %42 : vector<2x8x128xf32>
    %c0_16 = arith.constant 0 : index
    %44 = arith.index_cast %39 : i32 to index
    %c0_17 = arith.constant 0 : index
    %45 = vector.load %arg3[%c0_16, %44, %c0_17] : memref<2x8x128xf32, #tpu.memory_space<vmem>>, vector<2x8x128xf32>
    tpu.vector_store %arg3[%c0_16, %44, %c0_17], %43 {strides = array<i32>} : memref<2x8x128xf32, #tpu.memory_space<vmem>>, vector<2x8x128xf32>,
    %c1_i32_18 = arith.constant 1 : i32
    return
  }
  func.func @transform_0(%arg0: i32) -> (i32, i32) {
    %c0_i32 = arith.constant 0 : i32
    %c0_i32_0 = arith.constant 0 : i32
    %c0_i32_1 = arith.constant 0 : i32
    return %c0_i32, %c0_i32_0 : i32, i32
  }
  func.func @transform_1(%arg0: i32) -> (i32, i32, i32) {
    %c0_i32 = arith.constant 0 : i32
    %c0_i32_0 = arith.constant 0 : i32
    %c0_i32_1 = arith.constant 0 : i32
    return %arg0, %c0_i32, %c0_i32_0 : i32, i32, i32
  }
  func.func @transform_2(%arg0: i32) -> (i32, i32, i32) {
    %c0_i32 = arith.constant 0 : i32
    %c0_i32_0 = arith.constant 0 : i32
    %c0_i32_1 = arith.constant 0 : i32
    return %arg0, %c0_i32, %c0_i32_0 : i32, i32, i32
  }
}

</mosaic_0001>

<bundles_post_ra>
// kernel: tpu_custom_call.1
= control target key start
LH: loop header
LB: loop body
LE: loop exit
PB: predicated region body
PF: predicated region fallthrough
CT: control target
= control target key end

     0   :  { %7 = vsyncpa [#allocation3], 0  ;;  %s295_s0 = inlined_call_operand.vmem [shape: f32[8,128], index: 0, kind: input, shape index: {}]   ;;  %s296_s1 = inlined_call_operand.hbm [shape: f32[2,8,128], index: 1, kind: input, shape index: {}, may-alias: {1,2}]   ;;  %s297_s2 = inlined_call_operand.hbm [shape: f32[2,8,128], index: 2, kind: output, shape index: {}, may-alias: {1,2}]  }
   0x1   :  { %8 = vsyncpa [#allocation4], 0  ;;  %s235_s9 = smov [#allocation2]  }
   0x2   :  { %s16_s10 = sshll.u32 %s235_s9, 4  ;;  %s17_s10 = int_to_ptr.vmem [resolvable:$true] %s16_s10 }
   0x3   :  { %s199_s11 = scalar_lea.vmem %s17_s10, 256  ;;  %p204_p1 = scmp.lt.s32.totalorder %s17_s10, %s17_s10 }
   0x4   :  { %p200_p0 = scmp.ne.s32.totalorder %s17_s10, %s199_s11  ;;  %p205_p2 = scmp.lt.s32.totalorder %s199_s11, %s199_s11 }
   0x6   :  { %p206_p3 = por %p205_p2, %p204_p1 }
   0x8   :  { %p207_p4 = pnand %p206_p3, %p200_p0 }
   0xa   :  { %210 = shalt.err (!%p207_p4)
}
   0xb   :  { %s236_s12 = smov 128   ;;  %s237_s13 = smov 8  }
   0xc   :  { %22 = dma.hbm_to_vmem [thread:$0]  %s296_s1, 256, %s17_s10, [#allocation3], %s236_s12, %s236_s12, %s237_s13  }
   0xd   :  { %231 = dma.done.wait [#allocation3], 256  }
   0xe   :  { %232 = vsyncadd [#allocation3], 4294967040  ;;  %v266_v0 = vld [vmem:[#allocation2] sm:$0xff]  ;;  %v268_v1 = vld [vmem:[#allocation2 + $0x8] sm:$0xff]  ;;  %vm44_vm0 = vcmask 1041409   ;;  %s238_s1 = smov 16   ;;  %v123_v50 = vlaneseq }
   0xf   :  { %v28_v2 = vrot.slane %v266_v0, 4  ;;  %v34_v3 = vrot.slane %v268_v1, 4  ;;  %s239_s16 = smov 32   ;;  %s240_s17 = smov 64   ;;  %v174_v35 = vld [vmem:[%s295_s0 + $0x1] ss:$0 sm:$0xff] }
  0x10   :  { %s241_s18 = smov 127   ;;  %s242_s19 = smov 1   ;;  %v173_v36 = vld [vmem:[%s295_s0] ss:$0 sm:$0xff]  ;;  %v175_v37 = vld [vmem:[%s295_s0 + $0x2] ss:$0 sm:$0xff] }
  0x11   :  { %v29_v4 = vadd.f32 %v28_v2, %v266_v0  ;;  %v35_v5 = vadd.f32 %v34_v3, %v268_v1  ;;  %v243_v48 = vmov 1966171168   ;;  %v124_v52 = vshrl.u32 %v123_v50, 7  ;;  %s244_s0 = smov [#allocation5]  }
  0x12   :  { %v121_v49 = vunpack.c.l.s4 %v243_v48  ;;  %s161_s26 = sshll.u32 %s244_s0, 4  ;;  %s162_s26 = int_to_ptr.vmem [resolvable:$true] %s161_s26 }
  0x13   :  { %v30_v6 = vrot.slane %v29_v4, 2  ;;  %v36_v7 = vrot.slane %v35_v5, 2  ;;  %v144_v56 = vsub.s32 0, %v124_v52  ;;  %s211_s27 = scalar_lea.vmem %s162_s26, 256  ;;  %p216_p6 = scmp.lt.s32.totalorder %s162_s26, %s162_s26 }
  0x14   :  { %v122_v51 = vunpack.c.0.s8 %v121_v49  ;;  %p212_p5 = scmp.ne.s32.totalorder %s162_s26, %s211_s27  ;;  %p217_p7 = scmp.lt.s32.totalorder %s211_s27, %s211_s27 }
  0x15   :  { %v31_v8 = vadd.f32 %v30_v6, %v29_v4  ;;  %v37_v9 = vadd.f32 %v36_v7, %v35_v5 }
  0x16   :  { %v125_v53 = vsub.s32 %v122_v51, %v124_v52  ;;  %p218_p8 = por %p217_p7, %p216_p6 }
  0x17   :  { %v32_v10 = vrot.slane %v31_v8, 1  ;;  %v38_v11 = vrot.slane %v37_v9, 1 }
  0x18   :  { %p219_p9 = pnand %p218_p8, %p212_p5 }
  0x19   :  { %v33_v12 = vadd.f32 %v32_v10, %v31_v8  ;;  %v39_v13 = vadd.f32 %v38_v11, %v37_v9 }
  0x1b   :  { %v45_v14 = vsel %vm44_vm0, %v39_v13, %v33_v12 }
  0x1c   :  { %47 = vrot.lane.b32.xlu0 %v45_v14, %s238_s1 }
  0x8e   :  { %v48_v15 = vpop.permute.xlu0 %47 }
  0x8f   :  { %v50_v16 = vrot.slane %v48_v15, 1  ;;  %v53_v18 = vadd.f32 %v48_v15, %v33_v12 }
  0x91   :  { %v54_v17 = vadd.f32 %v50_v16, %v39_v13 }
  0x93   :  { %v57_v19 = vrot.slane %v54_v17, 7 }
  0x95   :  { %v58_v20 = vsel %vm44_vm0, %v57_v19, %v53_v18 }
  0x96   :  { %60 = vrot.lane.b32.xlu0 %v58_v20, %s239_s16 }
 0x108   :  { %v61_v21 = vpop.permute.xlu0 %60 }
 0x109   :  { %v63_v22 = vrot.slane %v61_v21, 1  ;;  %v66_v24 = vadd.f32 %v61_v21, %v53_v18 }
 0x10b   :  { %v67_v23 = vadd.f32 %v63_v22, %v54_v17 }
 0x10d   :  { %v70_v25 = vrot.slane %v67_v23, 7 }
 0x10f   :  { %v71_v26 = vsel %vm44_vm0, %v70_v25, %v66_v24 }
 0x110   :  { %73 = vrot.lane.b32.xlu1 %v71_v26, %s240_s17 }
 0x182   :  { %v74_v27 = vpop.permute.xlu1 %73 }
 0x183   :  { %v76_v28 = vrot.slane %v74_v27, 1  ;;  %v79_v29 = vadd.f32 %v74_v27, %v66_v24 }
 0x185   :  { %v80_v30 = vadd.f32 %v76_v28, %v67_v23  ;;  %v81_v32 = vmul.f32 0.015625, %v79_v29 }
 0x187   :  { %v82_v31 = vmul.f32 0.015625, %v80_v30 }
 0x189   :  { %v85_v33 = vrot.slane %v82_v31, 7 }
 0x18b   :  { %v86_v34 = vsel %vm44_vm0, %v85_v33, %v81_v32 }
 0x18c   :  { %104 = vrot.lane.b32.xlu0 %v86_v34, %s241_s18  ;;  %88 = vrot.lane.b32.xlu1 %v86_v34, %s242_s19  ;;  %v102_v40 = vmul.f32 %v174_v35, %v86_v34 }
 0x1fe   :  { %v105_v38 = vpop.permute.xlu0 %104  ;;  %v89_v39 = vpop.permute.xlu1 %88 }
 0x1ff   :  { %v95_v41 = vmul.f32 %v173_v36, %v89_v39  ;;  %v111_v42 = vmul.f32 %v175_v37, %v105_v38 }
 0x201   :  { %v103_v43 = vadd.f32 %v102_v40, %v95_v41 }
 0x203   :  { %v112_v44 = vadd.f32 %v111_v42, %v103_v43 }
 0x205   :  { %v176_v45 = vmul.f32 -1.442695, %v112_v44 }
 0x207   :  { %187 = vpow2.f32 %v176_v45 }
 0x214   :  { %v188_v46 = vpop.eup %187 }
 0x215   :  { %v116_v47 = vadd.f32 1.0, %v188_v46 }
 0x217   :  { %189 = vrcp.f32 %v116_v47 }
 0x224   :  { %v190_v54 = vpop.eup %189 }
 0x225   :  { %v126_v55 = vrot.slane %v190_v54, %v125_v53 }
 0x227   :  { %v127_v57 = vcombine.high %v126_v55, %v126_v55  ;;  %v134_v58 = vrot.slane %v126_v55, %v125_v53 }
 0x229   :  { %v141_v59 = vrot.slane %v127_v57, %v125_v53  ;;  %v145_v60 = vrot.slane %v134_v58, %v144_v56 }
 0x22b   :  { %v149_v61 = vrot.slane %v141_v59, %v144_v56  ;;  %v152_v62 = vmul.f32 %v145_v60, %v266_v0 }
 0x22d   :  { %v153_v63 = vmul.f32 %v149_v61, %v268_v1  ;;  %154 = vst [vmem:[#allocation5] sm:$0xff] %v152_v62 }
 0x22f   :  { %155 = vst [vmem:[#allocation5 + $0x8] sm:$0xff] %v153_v63 }
 0x230   :  { %222 = shalt.err (!%p219_p9)
}
 0x231   :  { %167 = dma.vmem_to_hbm [thread:$0]  %s162_s26, 256, %s297_s2, [#allocation4], %s236_s12, %s236_s12, %s237_s13  }
 0x232   :  { %233 = dma.done.wait [#allocation4], 256  }
 0x233   :  { %234 = vsyncadd [#allocation4], 4294967040 }
 0x234   :  { %171 = vsyncpa [#allocation3], 1 }
 0x235   :  { %172 = vsyncpa [#allocation4], 1 }

</bundles_post_ra>
